<compile_context>
chip_gen: v5e
topology: v5e:2x2
jax: 0.10.0
libtpu: 0.0.40
codegen_flags: <defaults>
</compile_context>

<pallas_src>
import jax
import jax.numpy as jnp
from jax.experimental import pallas as pl
from jax.experimental.pallas import tpu as pltpu

EMBED_DIM = 32
DEEP_LAYERS = [64, 32]
NUM_USERS = 1575
NUM_ITEMS = 5754


def _round_up(x, m):
    return ((x + m - 1) // m) * m


def neural_fm_kernel(ue_ref, ie_ref,
                     wfm_u_ref, wfm_i_ref,
                     w1_ref, b1_ref, w2_ref, b2_ref, w3_ref,
                     bias_ref,
                     o_ref):
    # Blocks arrive row-major (tb, D) bf16 straight from the gather (no host-side
    # transposed HBM copy).  Upcast once and relayout to batch-on-lanes (D, tb)
    # in-kernel; the transpose uses the XLU slot, which has slack here.
    ue = jnp.transpose(ue_ref[...].astype(jnp.float32))      # (D, tb) f32
    ie = jnp.transpose(ie_ref[...].astype(jnp.float32))      # (D, tb) f32

    # FM linear head: Linear(concat([ue, ie])) == sum_d(wu[d]*ue[d] + wi[d]*ie[d]).
    # VPU multiply + sublane (XLU) reduction, f32 throughout.
    head = wfm_u_ref[...] * ue + wfm_i_ref[...] * ie          # (D, tb) f32

    # Deep MLP on the elementwise interaction.  The two fat layers run on the
    # MXU with bf16 operands (weights pre-cast at the boundary) and f32
    # accumulation via preferred_element_type.
    inter = (ue * ie).astype(jnp.bfloat16)                    # (D, tb) bf16
    h = jnp.dot(w1_ref[...], inter,
                preferred_element_type=jnp.float32)           # (L1, tb) f32
    h = jnp.maximum(h + b1_ref[...], 0.0)
    h = jnp.dot(w2_ref[...], h.astype(jnp.bfloat16),
                preferred_element_type=jnp.float32)           # (L2, tb) f32
    h = jnp.maximum(h + b2_ref[...], 0.0)

    # Fold FM head, final Linear(L2->1) head and the two scalar biases into a
    # single accumulation; bias is a hoisted SMEM scalar read.
    bias = bias_ref[0]
    logits = (jnp.sum(head, axis=0, keepdims=True)
              + jnp.sum(w3_ref[...] * h, axis=0, keepdims=True)
              + bias)                                         # (1, tb) f32
    o_ref[...] = jax.nn.sigmoid(logits)                       # lane-dense store


def init_params(key):
    D = EMBED_DIM
    L1, L2 = DEEP_LAYERS
    ks = jax.random.split(key, 10)
    p = {
        # NOTE: embedding tables are stored in bf16 by design (halves the HBM
        # traffic of the dominant gather stream).  This is a deviation from the
        # f32 PyTorch module's parameter storage; all downstream math (kernel
        # and reference) uses these same bf16 values.
        "user_emb": (jax.random.normal(ks[0], (NUM_USERS, D), jnp.float32)
                     * 0.1).astype(jnp.bfloat16),
        "item_emb": (jax.random.normal(ks[1], (NUM_ITEMS, D), jnp.float32)
                     * 0.1).astype(jnp.bfloat16),
        # fm_layer: Linear(2D -> 1), torch weight shape (1, 2D)
        "wfm": jax.random.normal(ks[2], (1, 2 * D), jnp.float32) * 0.1,
        "bfm": jax.random.normal(ks[3], (1,), jnp.float32) * 0.1,
        # dnn: Linear(D->64), Linear(64->32), Linear(32->1) (torch (out, in))
        "w1": jax.random.normal(ks[4], (L1, D), jnp.float32) * 0.1,
        "b1": jax.random.normal(ks[5], (L1,), jnp.float32) * 0.1,
        "w2": jax.random.normal(ks[6], (L2, L1), jnp.float32) * 0.1,
        "b2": jax.random.normal(ks[7], (L2,), jnp.float32) * 0.1,
        "w3": jax.random.normal(ks[8], (1, L2), jnp.float32) * 0.1,
        "b3": jax.random.normal(ks[9], (1,), jnp.float32) * 0.1,
    }
    return p


def neural_fm_forward(user, item, params, *, tb=8192):
    D = EMBED_DIM
    L1, L2 = DEEP_LAYERS
    B = user.shape[0]

    # Batch tile: multiple of 128 lanes, large enough that the ~0.35us/step grid
    # overhead is amortized.  Cap so the grid keeps >=2 steps whenever the batch
    # allows (lets "parallel" shard tiles across both TCs on v7x).
    tb = max(128, (tb // 128) * 128)
    b128 = _round_up(B, 128)
    if b128 >= 256:
        tb = min(tb, _round_up(b128 // 2, 128))
    else:
        tb = min(tb, b128)
    Bp = _round_up(B, tb)
    if Bp != B:
        user = jnp.pad(user, (0, Bp - B))   # pad with index 0; tail sliced off below
        item = jnp.pad(item, (0, Bp - B))

    # Gather from the bf16 tables (half the HBM bytes of f32, no cast pass) and
    # feed the kernel row-major -- no host-side transpose / materialized copy.
    ue = params["user_emb"][user]          # (Bp, D) bf16
    ie = params["item_emb"][item]          # (Bp, D) bf16

    # Weights stay in torch (out, in) orientation for the batch-on-lanes layout.
    wfm = params["wfm"]                    # (1, 2D) f32
    wfm_u = wfm[:, :D].T                   # (D, 1) f32
    wfm_i = wfm[:, D:].T                   # (D, 1) f32
    w1 = params["w1"].astype(jnp.bfloat16)        # (L1, D)  bf16 MXU operand
    b1 = params["b1"].reshape(L1, 1)              # (L1, 1)  f32
    w2 = params["w2"].astype(jnp.bfloat16)        # (L2, L1) bf16 MXU operand
    b2 = params["b2"].reshape(L2, 1)              # (L2, 1)  f32
    w3 = params["w3"].T                           # (L2, 1)  f32
    bias = (params["bfm"] + params["b3"]).reshape(1)   # folded scalar biases (SMEM)

    rep = lambda i: (0, 0)                 # weights resident across batch tiles

    # Advisory cost estimate so XLA schedules the surrounding gather/pad sensibly.
    flops = Bp * (2 * D * L1 + 2 * L1 * L2 + 6 * D + 3 * L2)
    bytes_io = 2 * Bp * D * 2 + Bp * 4

    out = pl.pallas_call(
        neural_fm_kernel,
        out_shape=jax.ShapeDtypeStruct((1, Bp), jnp.float32),
        grid_spec=pltpu.PrefetchScalarGridSpec(
            num_scalar_prefetch=0,
            grid=(Bp // tb,),
            in_specs=[
                pl.BlockSpec((tb, D), lambda i: (i, 0)),   # user embeds (bf16)
                pl.BlockSpec((tb, D), lambda i: (i, 0)),   # item embeds (bf16)
                pl.BlockSpec((D, 1), rep),                 # wfm_u
                pl.BlockSpec((D, 1), rep),                 # wfm_i
                pl.BlockSpec((L1, D), rep),                # w1 (bf16)
                pl.BlockSpec((L1, 1), rep),                # b1
                pl.BlockSpec((L2, L1), rep),               # w2 (bf16)
                pl.BlockSpec((L2, 1), rep),                # b2
                pl.BlockSpec((L2, 1), rep),                # w3
                pl.BlockSpec(memory_space=pltpu.MemorySpace.SMEM),  # bfm + b3 scalar
            ],
            out_specs=pl.BlockSpec((1, tb), lambda i: (0, i)),      # lane-dense output
        ),
        compiler_params=pltpu.CompilerParams(
            dimension_semantics=("parallel",),      # batch tiles shard across TCs (v7x)
            vmem_limit_bytes=48 * 1024 * 1024,      # lane-padded (tb,32) bufs + f32 temps
        ),
        cost_estimate=pl.CostEstimate(
            flops=int(flops), transcendentals=int(Bp),
            bytes_accessed=int(bytes_io)),
    )(ue, ie, wfm_u, wfm_i, w1, b1, w2, b2, w3, bias)

    # torch .squeeze(): drop the unit dim; drop the padded tail.
    return out[0, :B]


def neural_fm_reference(user, item, params):
    # Pure-JAX reference: f32 math on the same (bf16-stored) parameters.  The
    # kernel additionally uses bf16 MXU operands with f32 accumulation, so the
    # comparison tolerance below is 1e-3.
    ue = params["user_emb"][user].astype(jnp.float32)
    ie = params["item_emb"][item].astype(jnp.float32)
    fm_in = jnp.concatenate([ue, ie], axis=1)
    fm_out = fm_in @ params["wfm"].T + params["bfm"]
    inter = ue * ie
    h = jnp.maximum(inter @ params["w1"].T + params["b1"], 0.0)
    h = jnp.maximum(h @ params["w2"].T + params["b2"], 0.0)
    deep = h @ params["w3"].T + params["b3"]
    return jax.nn.sigmoid(fm_out + deep)[:, 0]


if __name__ == "__main__":
    key = jax.random.PRNGKey(0)
    pkey, ukey, ikey = jax.random.split(key, 3)
    params = init_params(pkey)

    # Small batch: exercises the padded-tail, single-tile path.
    B = 16
    user = jax.random.randint(ukey, (B,), 0, NUM_USERS, dtype=jnp.int32)
    item = jax.random.randint(ikey, (B,), 0, NUM_ITEMS, dtype=jnp.int32)
    out = jax.block_until_ready(neural_fm_forward(user, item, params))
    ref = neural_fm_reference(user, item, params)
    assert out.shape == (B,)
    assert jnp.allclose(out, ref, atol=1e-3, rtol=1e-3), \
        f"max err {jnp.max(jnp.abs(out - ref))}"

    # Larger batch: multi-tile grid (tile cap keeps >=2 parallel grid steps).
    B2 = 2048
    u2 = jax.random.randint(jax.random.PRNGKey(1), (B2,), 0, NUM_USERS, dtype=jnp.int32)
    i2 = jax.random.randint(jax.random.PRNGKey(2), (B2,), 0, NUM_ITEMS, dtype=jnp.int32)
    out2 = jax.block_until_ready(neural_fm_forward(u2, i2, params))
    ref2 = neural_fm_reference(u2, i2, params)
    assert out2.shape == (B2,)
    assert jnp.allclose(out2, ref2, atol=1e-3, rtol=1e-3), \
        f"max err {jnp.max(jnp.abs(out2 - ref2))}"

    print("KERNEL_OK")
</pallas_src>

<mosaic_0001>
module attributes {stable_mosaic.version = 11 : i64} {
  func.func @neural_fm_kernel(%arg0: i32, %arg1: memref<128x32xbf16, #tpu.memory_space<vmem>>, %arg2: memref<128x32xbf16, #tpu.memory_space<vmem>>, %arg3: memref<32x1xf32, #tpu.memory_space<vmem>>, %arg4: memref<32x1xf32, #tpu.memory_space<vmem>>, %arg5: memref<64x32xbf16, #tpu.memory_space<vmem>>, %arg6: memref<64x1xf32, #tpu.memory_space<vmem>>, %arg7: memref<32x64xbf16, #tpu.memory_space<vmem>>, %arg8: memref<32x1xf32, #tpu.memory_space<vmem>>, %arg9: memref<32x1xf32, #tpu.memory_space<vmem>>, %arg10: memref<1xf32, #tpu.memory_space<smem>>, %arg11: memref<1x128xf32, #tpu.memory_space<vmem>>) attributes {dimension_semantics = [#tpu.dimension_semantics<parallel>], iteration_bounds = array<i64: 1>, scalar_prefetch = 0 : i64, scratch_operands = 0 : i64, tpu.core_type = #tpu.core_type<tc>, window_params = [{transform_indices = @transform_0, window_bounds = array<i64: 128, 32>}, {transform_indices = @transform_1, window_bounds = array<i64: 128, 32>}, {pipeline_mode = #tpu.pipeline_mode<synchronous>, transform_indices = @transform_2, window_bounds = array<i64: 32, 1>}, {pipeline_mode = #tpu.pipeline_mode<synchronous>, transform_indices = @transform_3, window_bounds = array<i64: 32, 1>}, {pipeline_mode = #tpu.pipeline_mode<synchronous>, transform_indices = @transform_4, window_bounds = array<i64: 64, 32>}, {pipeline_mode = #tpu.pipeline_mode<synchronous>, transform_indices = @transform_5, window_bounds = array<i64: 64, 1>}, {pipeline_mode = #tpu.pipeline_mode<synchronous>, transform_indices = @transform_6, window_bounds = array<i64: 32, 64>}, {pipeline_mode = #tpu.pipeline_mode<synchronous>, transform_indices = @transform_7, window_bounds = array<i64: 32, 1>}, {pipeline_mode = #tpu.pipeline_mode<synchronous>, transform_indices = @transform_8, window_bounds = array<i64: 32, 1>}, {transform_indices = @transform_9, window_bounds = array<i64: 1>}, {transform_indices = @transform_10, window_bounds = array<i64: 1, 128>}]} {
    %c0 = arith.constant 0 : index
    %c0_0 = arith.constant 0 : index
    %0 = vector.load %arg1[%c0, %c0_0] : memref<128x32xbf16, #tpu.memory_space<vmem>>, vector<128x32xbf16>
    %1 = arith.extf %0 : vector<128x32xbf16> to vector<128x32xf32>
    %2 = tpu.transpose %1, [1, 0] : vector<128x32xf32> -> vector<32x128xf32>
    %c0_1 = arith.constant 0 : index
    %c0_2 = arith.constant 0 : index
    %3 = vector.load %arg2[%c0_1, %c0_2] : memref<128x32xbf16, #tpu.memory_space<vmem>>, vector<128x32xbf16>
    %4 = arith.extf %3 : vector<128x32xbf16> to vector<128x32xf32>
    %5 = tpu.transpose %4, [1, 0] : vector<128x32xf32> -> vector<32x128xf32>
    %c0_3 = arith.constant 0 : index
    %c0_4 = arith.constant 0 : index
    %6 = vector.load %arg3[%c0_3, %c0_4] : memref<32x1xf32, #tpu.memory_space<vmem>>, vector<32x1xf32>
    %7 = vector.broadcast %6 : vector<32x1xf32> to vector<32x128xf32>
    %8 = arith.mulf %7, %2 : vector<32x128xf32>
    %c0_5 = arith.constant 0 : index
    %c0_6 = arith.constant 0 : index
    %9 = vector.load %arg4[%c0_5, %c0_6] : memref<32x1xf32, #tpu.memory_space<vmem>>, vector<32x1xf32>
    %10 = vector.broadcast %9 : vector<32x1xf32> to vector<32x128xf32>
    %11 = arith.mulf %10, %5 : vector<32x128xf32>
    %12 = arith.addf %8, %11 : vector<32x128xf32>
    %13 = arith.mulf %2, %5 : vector<32x128xf32>
    %14 = arith.truncf %13 : vector<32x128xf32> to vector<32x128xbf16>
    %c0_7 = arith.constant 0 : index
    %c0_8 = arith.constant 0 : index
    %15 = vector.load %arg5[%c0_7, %c0_8] : memref<64x32xbf16, #tpu.memory_space<vmem>>, vector<64x32xbf16>
    %cst = arith.constant dense<0.000000e+00> : vector<64x128xf32>
    %16 = tpu.matmul %15, %14, %cst {dimension_numbers = #tpu.dot_dimension_numbers<[1], [0], [0], [1], [0, 0, 1, 1], [], []>} : vector<64x32xbf16>, vector<32x128xbf16>, vector<64x128xf32> -> vector<64x128xf32>
    %c0_9 = arith.constant 0 : index
    %c0_10 = arith.constant 0 : index
    %17 = vector.load %arg6[%c0_9, %c0_10] : memref<64x1xf32, #tpu.memory_space<vmem>>, vector<64x1xf32>
    %18 = vector.broadcast %17 : vector<64x1xf32> to vector<64x128xf32>
    %19 = arith.addf %16, %18 : vector<64x128xf32>
    %cst_11 = arith.constant 0.000000e+00 : f32
    %20 = vector.broadcast %cst_11 : f32 to vector<64x128xf32>
    %21 = arith.maximumf %19, %20 : vector<64x128xf32>
    %c0_12 = arith.constant 0 : index
    %c0_13 = arith.constant 0 : index
    %22 = vector.load %arg7[%c0_12, %c0_13] : memref<32x64xbf16, #tpu.memory_space<vmem>>, vector<32x64xbf16>
    %23 = arith.truncf %21 : vector<64x128xf32> to vector<64x128xbf16>
    %cst_14 = arith.constant dense<0.000000e+00> : vector<32x128xf32>
    %24 = tpu.matmul %22, %23, %cst_14 {dimension_numbers = #tpu.dot_dimension_numbers<[1], [0], [0], [1], [0, 0, 1, 1], [], []>} : vector<32x64xbf16>, vector<64x128xbf16>, vector<32x128xf32> -> vector<32x128xf32>
    %c0_15 = arith.constant 0 : index
    %c0_16 = arith.constant 0 : index
    %25 = vector.load %arg8[%c0_15, %c0_16] : memref<32x1xf32, #tpu.memory_space<vmem>>, vector<32x1xf32>
    %26 = vector.broadcast %25 : vector<32x1xf32> to vector<32x128xf32>
    %27 = arith.addf %24, %26 : vector<32x128xf32>
    %cst_17 = arith.constant 0.000000e+00 : f32
    %28 = vector.broadcast %cst_17 : f32 to vector<32x128xf32>
    %29 = arith.maximumf %27, %28 : vector<32x128xf32>
    %c0_18 = arith.constant 0 : index
    %30 = memref.load %arg10[%c0_18] : memref<1xf32, #tpu.memory_space<smem>>
    %cst_19 = arith.constant dense<0.000000e+00> : vector<128xf32>
    %31 = vector.multi_reduction <add>, %12, %cst_19 [0] : vector<32x128xf32> to vector<128xf32>
    %32 = vector.shape_cast %31 : vector<128xf32> to vector<1x128xf32>
    %c0_20 = arith.constant 0 : index
    %c0_21 = arith.constant 0 : index
    %33 = vector.load %arg9[%c0_20, %c0_21] : memref<32x1xf32, #tpu.memory_space<vmem>>, vector<32x1xf32>
    %34 = vector.broadcast %33 : vector<32x1xf32> to vector<32x128xf32>
    %35 = arith.mulf %34, %29 : vector<32x128xf32>
    %cst_22 = arith.constant dense<0.000000e+00> : vector<128xf32>
    %36 = vector.multi_reduction <add>, %35, %cst_22 [0] : vector<32x128xf32> to vector<128xf32>
    %37 = vector.shape_cast %36 : vector<128xf32> to vector<1x128xf32>
    %38 = arith.addf %32, %37 : vector<1x128xf32>
    %39 = vector.broadcast %30 : f32 to vector<1x128xf32>
    %40 = arith.addf %38, %39 : vector<1x128xf32>
    %41 = arith.negf %40 : vector<1x128xf32>
    %42 = math.exp %41 : vector<1x128xf32>
    %cst_23 = arith.constant 1.000000e+00 : f32
    %43 = vector.broadcast %cst_23 : f32 to vector<1x128xf32>
    %44 = arith.addf %43, %42 : vector<1x128xf32>
    %45 = arith.divf %43, %44 : vector<1x128xf32>
    %c0_24 = arith.constant 0 : index
    %c0_25 = arith.constant 0 : index
    %46 = vector.load %arg11[%c0_24, %c0_25] : memref<1x128xf32, #tpu.memory_space<vmem>>, vector<1x128xf32>
    tpu.vector_store %arg11[%c0_24, %c0_25], %45 {strides = array<i32>} : memref<1x128xf32, #tpu.memory_space<vmem>>, vector<1x128xf32>,
    return
  }
  func.func @transform_0(%arg0: i32) -> (i32, i32) {
    %c0_i32 = arith.constant 0 : i32
    %c0_i32_0 = arith.constant 0 : i32
    return %arg0, %c0_i32 : i32, i32
  }
  func.func @transform_1(%arg0: i32) -> (i32, i32) {
    %c0_i32 = arith.constant 0 : i32
    %c0_i32_0 = arith.constant 0 : i32
    return %arg0, %c0_i32 : i32, i32
  }
  func.func @transform_2(%arg0: i32) -> (i32, i32) {
    %c0_i32 = arith.constant 0 : i32
    %c0_i32_0 = arith.constant 0 : i32
    %c0_i32_1 = arith.constant 0 : i32
    return %c0_i32, %c0_i32_0 : i32, i32
  }
  func.func @transform_3(%arg0: i32) -> (i32, i32) {
    %c0_i32 = arith.constant 0 : i32
    %c0_i32_0 = arith.constant 0 : i32
    %c0_i32_1 = arith.constant 0 : i32
    return %c0_i32, %c0_i32_0 : i32, i32
  }
  func.func @transform_4(%arg0: i32) -> (i32, i32) {
    %c0_i32 = arith.constant 0 : i32
    %c0_i32_0 = arith.constant 0 : i32
    %c0_i32_1 = arith.constant 0 : i32
    return %c0_i32, %c0_i32_0 : i32, i32
  }
  func.func @transform_5(%arg0: i32) -> (i32, i32) {
    %c0_i32 = arith.constant 0 : i32
    %c0_i32_0 = arith.constant 0 : i32
    %c0_i32_1 = arith.constant 0 : i32
    return %c0_i32, %c0_i32_0 : i32, i32
  }
  func.func @transform_6(%arg0: i32) -> (i32, i32) {
    %c0_i32 = arith.constant 0 : i32
    %c0_i32_0 = arith.constant 0 : i32
    %c0_i32_1 = arith.constant 0 : i32
    return %c0_i32, %c0_i32_0 : i32, i32
  }
  func.func @transform_7(%arg0: i32) -> (i32, i32) {
    %c0_i32 = arith.constant 0 : i32
    %c0_i32_0 = arith.constant 0 : i32
    %c0_i32_1 = arith.constant 0 : i32
    return %c0_i32, %c0_i32_0 : i32, i32
  }
  func.func @transform_8(%arg0: i32) -> (i32, i32) {
    %c0_i32 = arith.constant 0 : i32
    %c0_i32_0 = arith.constant 0 : i32
    %c0_i32_1 = arith.constant 0 : i32
    return %c0_i32, %c0_i32_0 : i32, i32
  }
  func.func @transform_9(%arg0: i32) -> i32 {
    %c0_i32 = arith.constant 0 : i32
    %c0_i32_0 = arith.constant 0 : i32
    return %c0_i32 : i32
  }
  func.func @transform_10(%arg0: i32) -> (i32, i32) {
    %c0_i32 = arith.constant 0 : i32
    %c0_i32_0 = arith.constant 0 : i32
    return %c0_i32, %arg0 : i32, i32
  }
}

</mosaic_0001>

<bundles_post_ra>
// kernel: tpu_custom_call.1
= control target key start
LH: loop header
LB: loop body
LE: loop exit
PB: predicated region body
PF: predicated region fallthrough
CT: control target
= control target key end

     0   :  { %v692_v3 = vmov 0   ;;  %s942_s0 = inlined_call_operand.vmem [shape: bf16[128,32], index: 0, kind: input, shape index: {}]   ;;  %s943_s1 = inlined_call_operand.vmem [shape: bf16[128,32], index: 1, kind: input, shape index: {}]   ;;  %s944_s2 = inlined_call_operand.vmem [shape: f32[32,1], index: 2, kind: input, shape index: {}]   ;;  %s945_s3 = inlined_call_operand.vmem [shape: f32[32,1], index: 3, kind: input, shape index: {}]   ;;  %s946_s4 = inlined_call_operand.vmem [shape: bf16[64,32], index: 4, kind: input, shape index: {}]   ;;  %s947_s5 = inlined_call_operand.vmem [shape: f32[64,1], index: 5, kind: input, shape index: {}]   ;;  %s948_s6 = inlined_call_operand.vmem [shape: bf16[32,64], index: 6, kind: input, shape index: {}]   ;;  %s949_s7 = inlined_call_operand.vmem [shape: f32[32,1], index: 7, kind: input, shape index: {}]   ;;  %s950_s8 = inlined_call_operand.vmem [shape: f32[32,1], index: 8, kind: input, shape index: {}]   ;;  %s951_s9 = inlined_call_operand.<no memory space> [shape: f32[1], index: 9, kind: input, shape index: {}]   ;;  %s952_s10 = inlined_call_operand.hbm [shape: f32[1,128], index: 10, kind: output, shape index: {}]  }
   0x1   :  { %v554_v0 = vld [vmem:[%s942_s0] sm:$0xff]   ;;  %v246_v2 = vld [vmem:[%s947_s5 + $0x30] sm:$0xff]  ;;  %659 = vset.pattern.permute.xlu1 %v692_v3  ;;  %v617_v4 = vld [vmem:[%s942_s0 + $0x8] sm:$0xff]   ;;  %660 = vset.pattern.permute.xlu2 %v692_v3 }
   0x2   :  { %v586_v1 = vld [vmem:[%s943_s1] sm:$0xff]   ;;  %v624_v5 = vld [vmem:[%s943_s1 + $0x8] sm:$0xff]   ;;  %280 = vperm.xlu1 %659, %v246_v2   ;;  %v618_v7 = vld [vmem:[%s942_s0 + $0x10] sm:$0xff]  }
   0x3   :  { %639 = vxpose.binary.xlu0.c.b16.start [1/16] (narrow) %v586_v1, %v554_v0, 32  ;;  %v244_v6 = vld [vmem:[%s947_s5 + $0x20] sm:$0xff]  ;;  %v625_v8 = vld [vmem:[%s943_s1 + $0x10] sm:$0xff]  }
   0x4   :  { %270 = vperm.xlu2 %660, %v244_v6  }
   0x5   :  { %16 = vsyncpa [#allocation4], 0  ;;  %v247_v9 = vld [vmem:[%s947_s5 + $0x38] sm:$0xff]  ;;  %v245_v10 = vld [vmem:[%s947_s5 + $0x28] sm:$0xff]  ;;  %vm308_vm0 = vcmask 261120   ;;  %vm400_vm1 = vcmask 523264  }
   0x6   :  { %v619_v11 = vld [vmem:[%s942_s0 + $0x18] sm:$0xff]   ;;  %v242_v13 = vld [vmem:[%s947_s5 + $0x10] sm:$0xff]  ;;  %v240_v15 = vld [vmem:[%s947_s5] sm:$0xff]  ;;  %s693_s16 = smov [#allocation3]  }
   0x7   :  { %v626_v12 = vld [vmem:[%s943_s1 + $0x18] sm:$0xff]   ;;  %v241_v16 = vld [vmem:[%s947_s5 + $0x8] sm:$0xff]  ;;  %v620_v17 = vld [vmem:[%s942_s0 + $0x20] sm:$0xff]   ;;  %s505_s17 = sshll.u32 %s693_s16, 4  ;;  %s506_s17 = int_to_ptr.vmem [resolvable:$true] %s505_s17 }
   0x8   :  { %v243_v14 = vld [vmem:[%s947_s5 + $0x18] sm:$0xff]  ;;  %v627_v18 = vld [vmem:[%s943_s1 + $0x20] sm:$0xff]   ;;  %v367_v20 = vld [vmem:[%s949_s7 + $0x8] sm:$0xff] }
   0x9   :  { %v366_v19 = vld [vmem:[%s949_s7] sm:$0xff]  ;;  %v167_v22 = vld [vmem:[%s944_s2 + $0x8] sm:$0xff]  ;;  %v622_v27 = vld [vmem:[%s942_s0 + $0x30] sm:$0xff]  }
   0xa   :  { %285 = vperm.xlu1 %659, %v247_v9   ;;  %v166_v21 = vld [vmem:[%s944_s2] sm:$0xff]  ;;  %v621_v23 = vld [vmem:[%s942_s0 + $0x28] sm:$0xff]   ;;  %v629_v28 = vld [vmem:[%s943_s1 + $0x30] sm:$0xff]  }
   0xb   :  { %v628_v24 = vld [vmem:[%s943_s1 + $0x28] sm:$0xff]   ;;  %v194_v25 = vld [vmem:[%s945_s3] sm:$0xff]  ;;  %v368_v29 = vld [vmem:[%s949_s7 + $0x10] sm:$0xff] }
   0xc   :  { %275 = vperm.xlu2 %660, %v245_v10   ;;  %v195_v26 = vld [vmem:[%s945_s3 + $0x8] sm:$0xff]  ;;  %v168_v30 = vld [vmem:[%s944_s2 + $0x10] sm:$0xff]  ;;  %v369_v32 = vld [vmem:[%s949_s7 + $0x18] sm:$0xff] }
   0xd   :  { %v196_v31 = vld [vmem:[%s945_s3 + $0x10] sm:$0xff]  ;;  %v623_v33 = vld [vmem:[%s942_s0 + $0x38] sm:$0xff]   ;;  %v440_v35 = vld [vmem:[%s950_s8] sm:$0xff] }
   0xe   :  { %v630_v34 = vld [vmem:[%s943_s1 + $0x38] sm:$0xff]   ;;  %v441_v36 = vld [vmem:[%s950_s8 + $0x8] sm:$0xff] }
   0xf   :  { %v169_v37 = vld [vmem:[%s944_s2 + $0x18] sm:$0xff] }
  0x10   :  { %v197_v38 = vld [vmem:[%s945_s3 + $0x18] sm:$0xff] }
  0x12   :  { %260 = vperm.xlu1 %659, %v242_v13  }
  0x13   :  { %640 = vxpose.binary.xlu0.c.b16.cont [2/16] (narrow) %v624_v5, %v617_v4, 32 }
  0x14   :  { %265 = vperm.xlu2 %660, %v243_v14  }
  0x1a   :  { %250 = vperm.xlu1 %659, %v240_v15  }
  0x1c   :  { %255 = vperm.xlu2 %660, %v241_v16  }
  0x22   :  { %372 = vperm.xlu1 %659, %v366_v19  }
  0x23   :  { %641 = vxpose.binary.xlu0.c.b16.cont [3/16] (narrow) %v625_v8, %v618_v7, 32 }
  0x24   :  { %377 = vperm.xlu2 %660, %v367_v20  }
  0x2a   :  { %172 = vperm.xlu1 %659, %v166_v21  }
  0x2c   :  { %177 = vperm.xlu2 %660, %v167_v22  }
  0x32   :  { %200 = vperm.xlu1 %659, %v194_v25  }
  0x33   :  { %642 = vxpose.binary.xlu0.c.b16.cont [4/16] (narrow) %v626_v12, %v619_v11, 32  ;;  %v442_v11 = vld [vmem:[%s950_s8 + $0x10] sm:$0xff]  ;;  %v443_v12 = vld [vmem:[%s950_s8 + $0x18] sm:$0xff] }
  0x34   :  { %205 = vperm.xlu2 %660, %v195_v26  }
  0x3a   :  { %382 = vperm.xlu1 %659, %v368_v29  }
  0x3c   :  { %182 = vperm.xlu2 %660, %v168_v30  }
  0x42   :  { %210 = vperm.xlu1 %659, %v196_v31  }
  0x43   :  { %643 = vxpose.binary.xlu0.c.b16.cont [5/16] (narrow) %v627_v18, %v620_v17, 32 }
  0x44   :  { %387 = vperm.xlu2 %660, %v369_v32  }
  0x4a   :  { %446 = vperm.xlu1 %659, %v440_v35   ;;  %v548_v35 = vld [vmem:[%s946_s4 + $0x8] sm:$0xff] }
  0x4c   :  { %451 = vperm.xlu2 %660, %v441_v36   ;;  %v550_v36 = vld [vmem:[%s946_s4 + $0x18] sm:$0xff] }
  0x52   :  { %187 = vperm.xlu1 %659, %v169_v37  }
  0x53   :  { %644 = vxpose.binary.xlu0.c.b16.cont [6/16] (narrow) %v628_v24, %v621_v23, 32 }
  0x54   :  { %215 = vperm.xlu2 %660, %v197_v38  }
  0x5a   :  { %456 = vperm.xlu1 %659, %v442_v11  }
  0x5c   :  { %461 = vperm.xlu2 %660, %v443_v12  }
  0x5e   :  { %v865_v39 = vpop.permute.xlu2 %270 }
  0x63   :  { %645 = vxpose.binary.xlu0.c.b16.cont [7/16] (narrow) %v629_v28, %v622_v27, 32 }
  0x66   :  { %v867_v40 = vpop.permute.xlu2 %275 }
  0x6e   :  { %v871_v42 = vpop.permute.xlu2 %265 }
  0x73   :  { %646 = vxpose.binary.xlu0.c.b16.end [8/16] (narrow) %v630_v34, %v623_v33, 32  ;;  %v547_v33 = vld [vmem:[%s946_s4] sm:$0xff]  ;;  %v549_v34 = vld [vmem:[%s946_s4 + $0x10] sm:$0xff] }
  0x74   :  { %v869_v41 = vpop.permute.xlu1 %280 }
  0x76   :  { %v875_v44 = vpop.permute.xlu2 %255 }
  0x7c   :  { %v873_v43 = vpop.permute.xlu1 %285 }
  0x7e   :  { %v879_v46 = vpop.permute.xlu2 %377 }
  0x84   :  { %v877_v45 = vpop.permute.xlu1 %260 }
  0x86   :  { %v178_v48 = vpop.permute.xlu2 %177 }
  0x8c   :  { %v881_v47 = vpop.permute.xlu1 %250 }
  0x8e   :  { %v206_v51 = vpop.permute.xlu2 %205 }
  0x94   :  { %v883_v49 = vpop.permute.xlu1 %372 }
  0x96   :  { %v183_v53 = vpop.permute.xlu2 %182 }
  0x9c   :  { %v173_v50 = vpop.permute.xlu1 %172 }
  0x9e   :  { %v887_v56 = vpop.permute.xlu2 %387 }
  0xa4   :  { %v201_v52 = vpop.permute.xlu1 %200 }
  0xa6   :  { %v889_v6 = vpop.permute.xlu2 %451 }
  0xac   :  { %v885_v54 = vpop.permute.xlu1 %382 }
  0xae   :  { %v216_v16 = vpop.permute.xlu2 %215 }
  0xaf   :  { %v647_v55 = vpop.trf.xlu0 }
  0xb0   :  { %v651_v57 = vunpack.c.h.bf16 %v647_v55  ;;  %v649_v58 = vunpack.c.l.bf16 %v647_v55 }
  0xb2   :  { %v191_v63 = vmul.f32 %v651_v57, %v178_v48  ;;  %v190_v0 = vmul.f32 %v649_v58, %v173_v50 }
  0xb4   :  { %v211_v59 = vpop.permute.xlu1 %210 }
  0xb7   :  { %v648_v60 = vpop.trf.xlu0 }
  0xb8   :  { %v652_v61 = vunpack.c.h.bf16 %v648_v60  ;;  %v650_v62 = vunpack.c.l.bf16 %v648_v60 }
  0xba   :  { %v219_v1 = vmul.f32 %v652_v61, %v206_v51  ;;  %v218_v2 = vmul.f32 %v650_v62, %v201_v52  ;;  %v226_v25 = vmul.f32 %v650_v62, %v649_v58  ;;  %v227_v29 = vmul.f32 %v652_v61, %v651_v57 }
  0xbc   :  { %v223_v4 = vadd.f32 %v219_v1, %v191_v63  ;;  %v222_v5 = vadd.f32 %v218_v2, %v190_v0  ;;  %v891_v8 = vpop.permute.xlu1 %446  ;;  %v230_v32 = vpack.c.bf16 %v227_v29, %v226_v25 }
  0xbe   :  { %v431_v7 = vadd.f32 %v223_v4, %v222_v5 }
  0xbf   :  { %v653_v9 = vpop.trf.xlu0 }
  0xc0   :  { %v655_v10 = vunpack.c.l.bf16 %v653_v9  ;;  %v657_v14 = vunpack.c.h.bf16 %v653_v9 }
  0xc2   :  { %v192_v19 = vmul.f32 %v655_v10, %v183_v53 }
  0xc4   :  { %v188_v13 = vpop.permute.xlu1 %187 }
  0xc5   :  { %v193_v20 = vmul.f32 %v657_v14, %v188_v13 }
  0xc7   :  { %v654_v15 = vpop.trf.xlu0 }
  0xc8   :  { %v658_v17 = vunpack.c.h.bf16 %v654_v15  ;;  %v656_v18 = vunpack.c.l.bf16 %v654_v15 }
  0xca   :  { %v229_v21 = vmul.f32 %v658_v17, %v657_v14  ;;  %v220_v22 = vmul.f32 %v656_v18, %v211_v59  ;;  %v228_v23 = vmul.f32 %v656_v18, %v655_v10  ;;  %v221_v24 = vmul.f32 %v658_v17, %v216_v16 }
  0xcc   :  { %v224_v26 = vadd.f32 %v220_v22, %v192_v19  ;;  %v225_v27 = vadd.f32 %v221_v24, %v193_v20  ;;  %v231_v28 = vpack.c.bf16 %v229_v21, %v228_v23 }
  0xce   :  { %v432_v30 = vadd.f32 %v431_v7, %v224_v26  ;;  %327 = vmatpush.bf16.msra.mxu0 %v231_v28  ;;  %631 = vmatpush.bf16.msra.mxu2 %v231_v28 }
  0xd0   :  { %v899_v31 = vadd.f32 %v432_v30, %v225_v27 }
  0xd2   :  { %328 = vmatpush.bf16.msra.mxu0 %v230_v32  ;;  %632 = vmatpush.bf16.msra.mxu2 %v230_v32  ;;  %v434_v17 = vrot.slane %v899_v31, 4 }
  0xd4   :  { %v435_v24 = vadd.f32 %v434_v17, %v899_v31 }
  0xd5   :  { %532 = vmatmul.msk.bf16.vlgmr.msra.gmra.mxu0 %vm308_vm0, %v547_v33  ;;  %534 = vmatmul.msk.bf16.vlgmr.msra.gmra.mxu2 %vm308_vm0, %v549_v34 }
  0xd6   :  { %v436_v28 = vrot.slane %v435_v24, 2 }
  0xd8   :  { %v437_v32 = vadd.f32 %v436_v28, %v435_v24 }
  0xda   :  { %661 = vset.pattern.permute.xlu0 %v692_v3  ;;  %v438_v34 = vrot.slane %v437_v32, 1 }
  0xe5   :  { %533 = vmatmul.msk.bf16.gmra.mxu0 %vm308_vm0, %v548_v35  ;;  %535 = vmatmul.msk.bf16.gmra.mxu2 %vm308_vm0, %v550_v36  ;;  %v439_v36 = vadd.f32 %v438_v34, %v437_v32 }
 0x152   :  { %v330_v37 = vpop.f32.mrf.mxu0 }
 0x158   :  { %v340_v38 = vpop.f32.mrf.mxu2 }
 0x159   :  { %v341_v59 = vadd.f32 %v340_v38, %v865_v39 }
 0x15a   :  { %v332_v48 = vpop.f32.mrf.mxu0 }
 0x15b   :  { %v354_v1 = vmax.f32 %v341_v59, 0.0 }
 0x160   :  { %v342_v50 = vpop.f32.mrf.mxu2 }
 0x161   :  { %v343_v3 = vadd.f32 %v342_v50, %v867_v40  ;;  %v333_v40 = vadd.f32 %v332_v48, %v875_v44 }
 0x162   :  { %v335_v51 = vpop.f32.mrf.mxu0 }
 0x163   :  { %v355_v62 = vmax.f32 %v343_v3, 0.0  ;;  %v336_v2 = vadd.f32 %v335_v51, %v877_v45  ;;  %v351_v7 = vmax.f32 %v333_v40, 0.0  ;;  %v551_v45 = vld [vmem:[%s948_s6] sm:$0xff] }
 0x165   :  { %v352_v5 = vmax.f32 %v336_v2, 0.0 }
 0x168   :  { %v345_v52 = vpop.f32.mrf.mxu2 }
 0x169   :  { %v346_v53 = vadd.f32 %v345_v52, %v869_v41  ;;  %v331_v41 = vadd.f32 %v330_v37, %v881_v47  ;;  %v552_v47 = vld [vmem:[%s948_s6 + $0x8] sm:$0xff] }
 0x16a   :  { %v337_v58 = vpop.f32.mrf.mxu0 }
 0x16b   :  { %v356_v60 = vmax.f32 %v346_v53, 0.0  ;;  %v338_v63 = vadd.f32 %v337_v58, %v871_v42  ;;  %v350_v39 = vmax.f32 %v331_v41, 0.0 }
 0x16d   :  { %v353_v4 = vmax.f32 %v338_v63, 0.0  ;;  %v362_v42 = vpack.c.bf16 %v351_v7, %v350_v39 }
 0x16f   :  { %v363_v9 = vpack.c.bf16 %v353_v4, %v352_v5 }
 0x170   :  { %v347_v55 = vpop.f32.mrf.mxu2 }
 0x171   :  { %v348_v57 = vadd.f32 %v347_v55, %v873_v43  ;;  %v364_v43 = vpack.c.bf16 %v355_v62, %v354_v1 }
 0x173   :  { %v357_v61 = vmax.f32 %v348_v57, 0.0 }
 0x175   :  { %v365_v0 = vpack.c.bf16 %v357_v61, %v356_v60 }
 0x177   :  { %411 = vmatpush.bf16.msra.mxu1 %v365_v0  ;;  %633 = vmatpush.bf16.msra.mxu3 %v365_v0 }
 0x17b   :  { %412 = vmatpush.bf16.msra.mxu1 %v364_v43  ;;  %634 = vmatpush.bf16.msra.mxu3 %v364_v43 }
 0x17f   :  { %413 = vmatpush.bf16.msra.mxu1 %v363_v9  ;;  %635 = vmatpush.bf16.msra.mxu3 %v363_v9 }
 0x183   :  { %414 = vmatpush.bf16.msra.mxu1 %v362_v42  ;;  %636 = vmatpush.bf16.msra.mxu3 %v362_v42 }
 0x186   :  { %544 = vmatmul.msk.bf16.vlgmr.msra.gmra.mxu1 %vm400_vm1, %v551_v45  ;;  %545 = vmatmul.msk.bf16.vlgmr.msra.gmra.mxu3 %vm400_vm1, %v552_v47 }
 0x203   :  { %v416_v44 = vpop.f32.mrf.mxu1 }
 0x204   :  { %v417_v10 = vadd.f32 %v416_v44, %v883_v49  ;;  %v457_v49 = vpop.permute.xlu1 %456 }
 0x206   :  { %v426_v13 = vmax.f32 %v417_v10, 0.0 }
 0x208   :  { %v464_v18 = vmul.f32 %v891_v8, %v426_v13 }
 0x209   :  { %v421_v11 = vpop.f32.mrf.mxu3 }
 0x20a   :  { %v422_v14 = vadd.f32 %v421_v11, %v885_v54  ;;  %v462_v54 = vpop.permute.xlu2 %461 }
 0x20b   :  { %v418_v12 = vpop.f32.mrf.mxu1 }
 0x20c   :  { %v419_v15 = vadd.f32 %v418_v12, %v879_v46  ;;  %v428_v19 = vmax.f32 %v422_v14, 0.0 }
 0x20e   :  { %v427_v16 = vmax.f32 %v419_v15, 0.0  ;;  %v466_v25 = vmul.f32 %v457_v49, %v428_v19 }
 0x210   :  { %v465_v20 = vmul.f32 %v889_v6, %v427_v16 }
 0x211   :  { %v423_v21 = vpop.f32.mrf.mxu3 }
 0x212   :  { %v468_v22 = vadd.f32 %v465_v20, %v464_v18  ;;  %v424_v23 = vadd.f32 %v423_v21, %v887_v56  ;;  %v478_v56 = vstv %s951_s9  ;;  %s507_s9 = sshll.u32 %s952_s10, 4  ;;  %s508_s9 = int_to_ptr.hbm [resolvable:$true] %s507_s9 }
 0x214   :  { %v429_v26 = vmax.f32 %v424_v23, 0.0  ;;  %v469_v46 = vadd.f32 %v468_v22, %v466_v25 }
 0x216   :  { %v467_v27 = vmul.f32 %v462_v54, %v429_v26 }
 0x218   :  { %v470_v29 = vadd.f32 %v469_v46, %v467_v27 }
 0x21a   :  { %v471_v30 = vrot.slane %v470_v29, 4 }
 0x21c   :  { %v472_v8 = vadd.f32 %v471_v30, %v470_v29 }
 0x21e   :  { %v473_v33 = vrot.slane %v472_v8, 2 }
 0x220   :  { %v474_v6 = vadd.f32 %v473_v33, %v472_v8 }
 0x222   :  { %v475_v35 = vrot.slane %v474_v6, 1 }
 0x224   :  { %v476_v37 = vadd.f32 %v475_v35, %v474_v6 }
 0x226   :  { %v477_v31 = vadd.f32 %v476_v37, %v439_v36 }
 0x228   :  { %v479_v38 = vadd.f32 %v478_v56, %v477_v31 }
 0x22a   :  { %v546_v48 = vmul.f32 -1.442695, %v479_v38 }
 0x22c   :  { %662 = vpow2.f32 %v546_v48 }
 0x232   :  { %v663_v50 = vpop.eup %662 }
 0x233   :  { %v483_v51 = vadd.f32 1.0, %v663_v50 }
 0x235   :  { %664 = vrcp.f32 %v483_v51  ;;  %v495_v3 = vand.u32 2147483648, %v483_v51  ;;  %v493_v58 = vand.u32 2147483647, %v483_v51  ;;  %vm489_vm3 = vweird.f32 %v483_v51 }
 0x237   :  { %v496_v60 = vor.u32 1.1754944e-38, %v495_v3  ;;  %vm494_vm5 = vcmp.eq.f32.partialorder %v493_v58, 8.507059e+37 }
 0x23b   :  { %v665_v52 = vpop.eup %664 }
 0x23c   :  { %v485_v53 = vmul.f32 %v665_v52, %v483_v51  ;;  %vm490_vm2 = vweird.f32 %v665_v52 }
 0x23d   :  { %vm491_vm4 = vmor %vm489_vm3, %vm490_vm2 }
 0x23e   :  { %v486_v55 = vsub.f32 1.0, %v485_v53 }
 0x240   :  { %v487_v57 = vmul.f32 %v665_v52, %v486_v55 }
 0x242   :  { %v488_v59 = vadd.f32 %v665_v52, %v487_v57 }
 0x244   :  { %v492_v61 = vsel %vm491_vm4, %v665_v52, %v488_v59 }
 0x245   :  { %v497_v62 = vsel %vm494_vm5, %v496_v60, %v492_v61 }
 0x246   :  { %499 = vst [vmem:[#allocation3] sm:$0x1] %v497_v62 }
 0x247   :  { %510 = dma.vmem_to_hbm [thread:$0]  %s506_s17, 16, %s508_s9, [#allocation4]  }
 0x248   :  { %690 = dma.done.wait [#allocation4], 16  }
 0x249   :  { %691 = vsyncadd [#allocation4], 4294967280 }
 0x24a   :  { %515 = vsyncpa [#allocation4], 1 }

</bundles_post_ra>
